<compile_context>
chip_gen: v7x
topology: tpu7x:2x2x1
jax: 0.10.0
libtpu: 0.0.40
codegen_flags: <defaults>
</compile_context>

<pallas_src>
import functools

import jax
import jax.numpy as jnp
from jax.experimental import pallas as pl
from jax.experimental.pallas import tpu as pltpu

DICE_WEIGHT = 0.3
BCE_WEIGHT = 0.3
FOCAL_WEIGHT = 0.4
FOCAL_ALPHA = 0.75
FOCAL_EPS = 1e-6
DICE_SMOOTH = 1.0

_LANE = 128


def _round_up(value, multiple):
    return ((value + multiple - 1) // multiple) * multiple


def _choose_tile_n(batch, n, x_itemsize, t_itemsize,
                   budget_bytes=20 * 1024 * 1024, max_tile=32768):
    """Largest lane tile (multiple of 128) whose double-buffered inputs plus the three
    f32 accumulators stay within `budget_bytes` of VMEM."""
    bytes_per_lane = batch * (2 * (x_itemsize + t_itemsize) + 3 * 4)
    tile = budget_bytes // max(bytes_per_lane, 1)
    tile = max(_LANE, (tile // _LANE) * _LANE)
    return int(min(tile, _round_up(n, _LANE), max_tile))


def _loss_kernel(x_ref, t_ref, o_ref,
                 acc_cmb, acc_inter, acc_denom,
                 *, n_total, tile_n, inv_count):
    step = pl.program_id(0)
    last = pl.num_programs(0) - 1

    @pl.when(step == 0)
    def _init():
        acc_cmb[...] = jnp.zeros_like(acc_cmb)
        acc_inter[...] = jnp.zeros_like(acc_inter)
        acc_denom[...] = jnp.zeros_like(acc_denom)

    x = x_ref[...].astype(jnp.float32)   # logits tile, (B, tile_n)
    t = t_ref[...].astype(jnp.float32)   # targets tile, (B, tile_n)

    # Shared exp(-|x|): feeds both the stable softplus (BCE) and the sigmoid, saving
    # one EUP exp per element relative to calling jax.nn.sigmoid separately.
    e = jnp.exp(-jnp.abs(x))
    softplus = jnp.log1p(e)                          # log(1 + exp(-|x|)), log1p-stable
    bce = jnp.maximum(x, 0.0) - x * t + softplus     # BCEWithLogits, reduction='none'
    # Exact reciprocal keeps 1e-5 parity with the f32 reference
    # (pl.reciprocal(..., approx=True) would relax that for a small EUP saving).
    r = 1.0 / (1.0 + e)
    probs = jnp.where(x >= 0.0, r, e * r)            # sigmoid(x), no second exp

    pt = jnp.clip(probs, FOCAL_EPS, 1.0 - FOCAL_EPS)
    one_minus_pt = 1.0 - pt
    focal_w = (FOCAL_ALPHA * one_minus_pt * one_minus_pt) * t \
        + ((1.0 - FOCAL_ALPHA) * pt * pt) * (1.0 - t)
    # Pre-weighted BCE + Focal share one accumulator:
    #   w_bce*bce + w_focal*(focal_w*bce) == bce*(w_bce + w_focal*focal_w)
    combined = bce * (BCE_WEIGHT + FOCAL_WEIGHT * focal_w)

    if n_total % tile_n != 0:
        # Ragged final tile: mask padded lanes out of every sum (jnp.where so any
        # NaN/Inf garbage in the padded region cannot leak through a multiply-by-0).
        col = jax.lax.broadcasted_iota(jnp.int32, x.shape, 1) + step * tile_n
        valid = col < n_total
        combined = jnp.where(valid, combined, 0.0)
        probs = jnp.where(valid, probs, 0.0)
        t = jnp.where(valid, t, 0.0)

    # Lane-dense elementwise accumulation (VPU only) -- cross-lane reduces deferred to
    # the one-time epilogue below so they stay off the XLU in the steady-state loop.
    acc_cmb[...] += combined
    acc_inter[...] += probs * t
    acc_denom[...] += probs + t

    @pl.when(step == last)
    def _finalize():
        bce_focal = jnp.sum(acc_cmb[...]) * inv_count                        # weighted
        inter = jnp.sum(acc_inter[...], axis=1, keepdims=True)               # (B, 1)
        denom = jnp.sum(acc_denom[...], axis=1, keepdims=True) + DICE_SMOOTH  # (B, 1)
        dice_score = (2.0 * inter + DICE_SMOOTH) / denom
        dice_loss = 1.0 - jnp.mean(dice_score)
        total = DICE_WEIGHT * dice_loss + bce_focal
        o_ref[...] = jnp.full(o_ref.shape, total, dtype=jnp.float32)


def bce_dice_focal_loss(inputs, targets, *, tile_n=None):
    """inputs/targets: (B, C, H, W).  Any float dtype is accepted (bf16 targets/logits
    halve HBM traffic; the kernel upcasts to f32 internally).  Returns scalar f32."""
    batch = inputs.shape[0]
    x = inputs.reshape(batch, -1)
    t = targets.reshape(batch, -1)
    n = x.shape[1]

    if tile_n is None:
        tile_n = _choose_tile_n(batch, n, x.dtype.itemsize, t.dtype.itemsize)
    else:
        tile_n = int(min(max(_LANE, (tile_n // _LANE) * _LANE), _round_up(n, _LANE)))

    grid = (pl.cdiv(n, tile_n),)
    kernel = functools.partial(
        _loss_kernel, n_total=n, tile_n=tile_n, inv_count=1.0 / float(batch * n))

    out = pl.pallas_call(
        kernel,
        out_shape=jax.ShapeDtypeStruct((1, _LANE), jnp.float32),
        grid_spec=pltpu.PrefetchScalarGridSpec(
            num_scalar_prefetch=0,
            grid=grid,
            in_specs=[
                pl.BlockSpec((batch, tile_n), lambda i: (0, i)),
                pl.BlockSpec((batch, tile_n), lambda i: (0, i)),
            ],
            out_specs=pl.BlockSpec((1, _LANE), lambda i: (0, 0)),
            scratch_shapes=[pltpu.VMEM((batch, tile_n), jnp.float32)] * 3,
        ),
        compiler_params=pltpu.CompilerParams(
            dimension_semantics=("arbitrary",),   # reduction axis: accumulators carried
            vmem_limit_bytes=32 * 1024 * 1024,
        ),
        cost_estimate=pl.CostEstimate(
            flops=int(25 * batch * n),
            transcendentals=int(2 * batch * n),
            bytes_accessed=int(x.size * x.dtype.itemsize
                               + t.size * t.dtype.itemsize
                               + _LANE * 4),
        ),
    )(x, t)
    # Note: for very large inputs on v7x one could add a leading "parallel" grid axis
    # over N-chunks emitting per-chunk partials combined in JAX to use both TensorCores;
    # at these shapes the single streaming reduction is already HBM-bound.
    return out[0, 0]


def _reference_loss(inputs, targets):
    # Pure-JAX reference (matches PyTorch BCEWithLogits + Dice + Focal semantics).
    batch = inputs.shape[0]
    x = inputs.reshape(batch, -1).astype(jnp.float32)
    t = targets.reshape(batch, -1).astype(jnp.float32)
    bce = jnp.maximum(x, 0.0) - x * t + jnp.log1p(jnp.exp(-jnp.abs(x)))
    bce_mean = jnp.mean(bce)
    probs = jax.nn.sigmoid(x)
    inter = jnp.sum(probs * t, axis=1)
    dice = (2.0 * inter + DICE_SMOOTH) / (
        jnp.sum(probs, axis=1) + jnp.sum(t, axis=1) + DICE_SMOOTH)
    dice_loss = 1.0 - jnp.mean(dice)
    pt = jnp.clip(probs, FOCAL_EPS, 1.0 - FOCAL_EPS)
    fw = FOCAL_ALPHA * (1.0 - pt) ** 2 * t + (1.0 - FOCAL_ALPHA) * pt ** 2 * (1.0 - t)
    focal_mean = jnp.mean(fw * bce)
    return DICE_WEIGHT * dice_loss + BCE_WEIGHT * bce_mean + FOCAL_WEIGHT * focal_mean


if __name__ == "__main__":
    key = jax.random.PRNGKey(0)
    k1, k2, k3, k4 = jax.random.split(key, 4)

    # Case 1: canonical small NCHW shape; bf16 binary targets (exact 0/1) halve traffic.
    B, C, H, W = 2, 4, 16, 16
    logits = jax.random.normal(k1, (B, C, H, W), dtype=jnp.float32)
    targets = (jax.random.uniform(k2, (B, C, H, W)) > 0.5).astype(jnp.bfloat16)
    loss = jax.block_until_ready(bce_dice_focal_loss(logits, targets))
    ref = _reference_loss(logits, targets)
    assert jnp.allclose(loss, ref, atol=1e-5, rtol=1e-5), (loss, ref)

    # Case 2: force a multi-step reduction grid (tile_n=256 over N=1024) to exercise
    # the accumulator init / accumulate / finalize path.
    loss2 = jax.block_until_ready(bce_dice_focal_loss(logits, targets, tile_n=256))
    assert jnp.allclose(loss2, ref, atol=1e-5, rtol=1e-5), (loss2, ref)

    # Case 3: ragged N (= 3*10*10 = 300, not a multiple of 128) with a small tile to
    # exercise the in-kernel lane mask on the padded final block.
    logits3 = jax.random.normal(k3, (2, 3, 10, 10), dtype=jnp.float32)
    targets3 = (jax.random.uniform(k4, (2, 3, 10, 10)) > 0.5).astype(jnp.float32)
    loss3 = jax.block_until_ready(bce_dice_focal_loss(logits3, targets3, tile_n=128))
    ref3 = _reference_loss(logits3, targets3)
    assert jnp.allclose(loss3, ref3, atol=1e-5, rtol=1e-5), (loss3, ref3)

    print("KERNEL_OK")
</pallas_src>

<mosaic_0001>
module attributes {stable_mosaic.version = 11 : i64} {
  func.func @_loss_kernel(%arg0: i32, %arg1: memref<2x1024xf32, #tpu.memory_space<vmem>>, %arg2: memref<2x1024xbf16, #tpu.memory_space<vmem>>, %arg3: memref<1x128xf32, #tpu.memory_space<vmem>>, %arg4: memref<2x1024xf32, #tpu.memory_space<vmem>>, %arg5: memref<2x1024xf32, #tpu.memory_space<vmem>>, %arg6: memref<2x1024xf32, #tpu.memory_space<vmem>>) attributes {dimension_semantics = [#tpu.dimension_semantics<arbitrary>], iteration_bounds = array<i64: 1>, scalar_prefetch = 0 : i64, scratch_operands = 3 : i64, tpu.core_type = #tpu.core_type<tc>, window_params = [{transform_indices = @transform_0, window_bounds = array<i64: 2, 1024>}, {transform_indices = @transform_1, window_bounds = array<i64: 2, 1024>}, {pipeline_mode = #tpu.pipeline_mode<synchronous>, transform_indices = @transform_2, window_bounds = array<i64: 1, 128>}]} {
    %c0_i32 = arith.constant 0 : i32
    %0 = arith.cmpi eq, %arg0, %c0_i32 : i32
    %1 = arith.extui %0 : i1 to i32
    %c0_i32_0 = arith.constant 0 : i32
    %2 = arith.cmpi ne, %1, %c0_i32_0 : i32
    scf.if %2 {
      %cst_30 = arith.constant 0.000000e+00 : f32
      %60 = vector.broadcast %cst_30 : f32 to vector<2x1024xf32>
      %c0_31 = arith.constant 0 : index
      %c0_32 = arith.constant 0 : index
      %61 = vector.load %arg4[%c0_31, %c0_32] : memref<2x1024xf32, #tpu.memory_space<vmem>>, vector<2x1024xf32>
      tpu.vector_store %arg4[%c0_31, %c0_32], %60 {strides = array<i32>} : memref<2x1024xf32, #tpu.memory_space<vmem>>, vector<2x1024xf32>,
      %cst_33 = arith.constant 0.000000e+00 : f32
      %62 = vector.broadcast %cst_33 : f32 to vector<2x1024xf32>
      %c0_34 = arith.constant 0 : index
      %c0_35 = arith.constant 0 : index
      %63 = vector.load %arg5[%c0_34, %c0_35] : memref<2x1024xf32, #tpu.memory_space<vmem>>, vector<2x1024xf32>
      tpu.vector_store %arg5[%c0_34, %c0_35], %62 {strides = array<i32>} : memref<2x1024xf32, #tpu.memory_space<vmem>>, vector<2x1024xf32>,
      %cst_36 = arith.constant 0.000000e+00 : f32
      %64 = vector.broadcast %cst_36 : f32 to vector<2x1024xf32>
      %c0_37 = arith.constant 0 : index
      %c0_38 = arith.constant 0 : index
      %65 = vector.load %arg6[%c0_37, %c0_38] : memref<2x1024xf32, #tpu.memory_space<vmem>>, vector<2x1024xf32>
      tpu.vector_store %arg6[%c0_37, %c0_38], %64 {strides = array<i32>} : memref<2x1024xf32, #tpu.memory_space<vmem>>, vector<2x1024xf32>,
    } else {
    }
    %c0 = arith.constant 0 : index
    %c0_1 = arith.constant 0 : index
    %3 = vector.load %arg1[%c0, %c0_1] : memref<2x1024xf32, #tpu.memory_space<vmem>>, vector<2x1024xf32>
    %c0_2 = arith.constant 0 : index
    %c0_3 = arith.constant 0 : index
    %4 = vector.load %arg2[%c0_2, %c0_3] : memref<2x1024xbf16, #tpu.memory_space<vmem>>, vector<2x1024xbf16>
    %5 = arith.extf %4 : vector<2x1024xbf16> to vector<2x1024xf32>
    %6 = math.absf %3 : vector<2x1024xf32>
    %cst = arith.constant 0.000000e+00 : f32
    %7 = vector.broadcast %cst : f32 to vector<2x1024xf32>
    %8 = arith.subf %7, %6 : vector<2x1024xf32>
    %9 = math.exp %8 : vector<2x1024xf32>
    %10 = math.log1p %9 : vector<2x1024xf32>
    %cst_4 = arith.constant 0.000000e+00 : f32
    %11 = vector.broadcast %cst_4 : f32 to vector<2x1024xf32>
    %12 = arith.maximumf %3, %11 : vector<2x1024xf32>
    %13 = arith.mulf %3, %5 : vector<2x1024xf32>
    %14 = arith.subf %12, %13 : vector<2x1024xf32>
    %15 = arith.addf %14, %10 : vector<2x1024xf32>
    %cst_5 = arith.constant 1.000000e+00 : f32
    %16 = vector.broadcast %cst_5 : f32 to vector<2x1024xf32>
    %17 = arith.addf %16, %9 : vector<2x1024xf32>
    %cst_6 = arith.constant 1.000000e+00 : f32
    %18 = vector.broadcast %cst_6 : f32 to vector<2x1024xf32>
    %19 = arith.divf %18, %17 : vector<2x1024xf32>
    %cst_7 = arith.constant 0.000000e+00 : f32
    %20 = vector.broadcast %cst_7 : f32 to vector<2x1024xf32>
    %21 = arith.cmpf oge, %3, %20 : vector<2x1024xf32>
    %22 = arith.mulf %9, %19 : vector<2x1024xf32>
    %23 = arith.select %21, %19, %22 : vector<2x1024xi1>, vector<2x1024xf32>
    %cst_8 = arith.constant 9.99999997E-7 : f32
    %cst_9 = arith.constant 0.999998986 : f32
    %24 = vector.broadcast %cst_8 : f32 to vector<2x1024xf32>
    %25 = arith.maximumf %24, %23 : vector<2x1024xf32>
    %26 = vector.broadcast %cst_9 : f32 to vector<2x1024xf32>
    %27 = arith.minimumf %26, %25 : vector<2x1024xf32>
    %cst_10 = arith.constant 1.000000e+00 : f32
    %28 = vector.broadcast %cst_10 : f32 to vector<2x1024xf32>
    %29 = arith.subf %28, %27 : vector<2x1024xf32>
    %cst_11 = arith.constant 7.500000e-01 : f32
    %30 = vector.broadcast %cst_11 : f32 to vector<2x1024xf32>
    %31 = arith.mulf %30, %29 : vector<2x1024xf32>
    %32 = arith.mulf %31, %29 : vector<2x1024xf32>
    %33 = arith.mulf %32, %5 : vector<2x1024xf32>
    %cst_12 = arith.constant 2.500000e-01 : f32
    %34 = vector.broadcast %cst_12 : f32 to vector<2x1024xf32>
    %35 = arith.mulf %34, %27 : vector<2x1024xf32>
    %36 = arith.mulf %35, %27 : vector<2x1024xf32>
    %cst_13 = arith.constant 1.000000e+00 : f32
    %37 = vector.broadcast %cst_13 : f32 to vector<2x1024xf32>
    %38 = arith.subf %37, %5 : vector<2x1024xf32>
    %39 = arith.mulf %36, %38 : vector<2x1024xf32>
    %40 = arith.addf %33, %39 : vector<2x1024xf32>
    %cst_14 = arith.constant 4.000000e-01 : f32
    %41 = vector.broadcast %cst_14 : f32 to vector<2x1024xf32>
    %42 = arith.mulf %41, %40 : vector<2x1024xf32>
    %cst_15 = arith.constant 3.000000e-01 : f32
    %43 = vector.broadcast %cst_15 : f32 to vector<2x1024xf32>
    %44 = arith.addf %43, %42 : vector<2x1024xf32>
    %45 = arith.mulf %15, %44 : vector<2x1024xf32>
    %c0_16 = arith.constant 0 : index
    %c0_17 = arith.constant 0 : index
    %46 = vector.load %arg4[%c0_16, %c0_17] : memref<2x1024xf32, #tpu.memory_space<vmem>>, vector<2x1024xf32>
    %47 = arith.addf %46, %45 : vector<2x1024xf32>
    %c0_18 = arith.constant 0 : index
    %c0_19 = arith.constant 0 : index
    %48 = vector.load %arg4[%c0_18, %c0_19] : memref<2x1024xf32, #tpu.memory_space<vmem>>, vector<2x1024xf32>
    tpu.vector_store %arg4[%c0_18, %c0_19], %47 {strides = array<i32>} : memref<2x1024xf32, #tpu.memory_space<vmem>>, vector<2x1024xf32>,
    %c0_20 = arith.constant 0 : index
    %c0_21 = arith.constant 0 : index
    %49 = vector.load %arg5[%c0_20, %c0_21] : memref<2x1024xf32, #tpu.memory_space<vmem>>, vector<2x1024xf32>
    %50 = arith.mulf %23, %5 : vector<2x1024xf32>
    %51 = arith.addf %49, %50 : vector<2x1024xf32>
    %c0_22 = arith.constant 0 : index
    %c0_23 = arith.constant 0 : index
    %52 = vector.load %arg5[%c0_22, %c0_23] : memref<2x1024xf32, #tpu.memory_space<vmem>>, vector<2x1024xf32>
    tpu.vector_store %arg5[%c0_22, %c0_23], %51 {strides = array<i32>} : memref<2x1024xf32, #tpu.memory_space<vmem>>, vector<2x1024xf32>,
    %c0_24 = arith.constant 0 : index
    %c0_25 = arith.constant 0 : index
    %53 = vector.load %arg6[%c0_24, %c0_25] : memref<2x1024xf32, #tpu.memory_space<vmem>>, vector<2x1024xf32>
    %54 = arith.addf %23, %5 : vector<2x1024xf32>
    %55 = arith.addf %53, %54 : vector<2x1024xf32>
    %c0_26 = arith.constant 0 : index
    %c0_27 = arith.constant 0 : index
    %56 = vector.load %arg6[%c0_26, %c0_27] : memref<2x1024xf32, #tpu.memory_space<vmem>>, vector<2x1024xf32>
    tpu.vector_store %arg6[%c0_26, %c0_27], %55 {strides = array<i32>} : memref<2x1024xf32, #tpu.memory_space<vmem>>, vector<2x1024xf32>,
    %c0_i32_28 = arith.constant 0 : i32
    %57 = arith.cmpi eq, %arg0, %c0_i32_28 : i32
    %58 = arith.extui %57 : i1 to i32
    %c0_i32_29 = arith.constant 0 : i32
    %59 = arith.cmpi ne, %58, %c0_i32_29 : i32
    scf.if %59 {
      %c0_30 = arith.constant 0 : index
      %c0_31 = arith.constant 0 : index
      %60 = vector.load %arg4[%c0_30, %c0_31] : memref<2x1024xf32, #tpu.memory_space<vmem>>, vector<2x1024xf32>
      %61 = vector.shape_cast %60 : vector<2x1024xf32> to vector<1x2x1024xf32>
      %cst_32 = arith.constant dense<0.000000e+00> : vector<1xf32>
      %62 = vector.multi_reduction <add>, %61, %cst_32 [1, 2] : vector<1x2x1024xf32> to vector<1xf32>
      %63 = vector.shape_cast %62 : vector<1xf32> to vector<1x1x1xf32>
      %64 = vector.extract %63[0, 0, 0] : f32 from vector<1x1x1xf32>
      %cst_33 = arith.constant 4.8828125E-4 : f32
      %65 = arith.mulf %64, %cst_33 : f32
      %c0_34 = arith.constant 0 : index
      %c0_35 = arith.constant 0 : index
      %66 = vector.load %arg5[%c0_34, %c0_35] : memref<2x1024xf32, #tpu.memory_space<vmem>>, vector<2x1024xf32>
      %cst_36 = arith.constant dense<0.000000e+00> : vector<2xf32>
      %67 = vector.multi_reduction <add>, %66, %cst_36 [1] : vector<2x1024xf32> to vector<2xf32>
      %68 = vector.shape_cast %67 : vector<2xf32> to vector<2x1xf32>
      %c0_37 = arith.constant 0 : index
      %c0_38 = arith.constant 0 : index
      %69 = vector.load %arg6[%c0_37, %c0_38] : memref<2x1024xf32, #tpu.memory_space<vmem>>, vector<2x1024xf32>
      %cst_39 = arith.constant dense<0.000000e+00> : vector<2xf32>
      %70 = vector.multi_reduction <add>, %69, %cst_39 [1] : vector<2x1024xf32> to vector<2xf32>
      %71 = vector.shape_cast %70 : vector<2xf32> to vector<2x1xf32>
      %cst_40 = arith.constant 1.000000e+00 : f32
      %72 = vector.broadcast %cst_40 : f32 to vector<2x1xf32>
      %73 = arith.addf %71, %72 : vector<2x1xf32>
      %cst_41 = arith.constant 2.000000e+00 : f32
      %74 = vector.broadcast %cst_41 : f32 to vector<2x1xf32>
      %75 = arith.mulf %74, %68 : vector<2x1xf32>
      %cst_42 = arith.constant 1.000000e+00 : f32
      %76 = vector.broadcast %cst_42 : f32 to vector<2x1xf32>
      %77 = arith.addf %75, %76 : vector<2x1xf32>
      %78 = arith.divf %77, %73 : vector<2x1xf32>
      %79 = vector.shape_cast %78 : vector<2x1xf32> to vector<1x2x1xf32>
      %cst_43 = arith.constant dense<0.000000e+00> : vector<1xf32>
      %80 = vector.multi_reduction <add>, %79, %cst_43 [1, 2] : vector<1x2x1xf32> to vector<1xf32>
      %81 = vector.shape_cast %80 : vector<1xf32> to vector<1x1x1xf32>
      %82 = vector.extract %81[0, 0, 0] : f32 from vector<1x1x1xf32>
      %cst_44 = arith.constant 2.000000e+00 : f32
      %83 = arith.divf %82, %cst_44 : f32
      %cst_45 = arith.constant 1.000000e+00 : f32
      %84 = arith.subf %cst_45, %83 : f32
      %cst_46 = arith.constant 3.000000e-01 : f32
      %85 = arith.mulf %cst_46, %84 : f32
      %86 = arith.addf %85, %65 : f32
      %87 = vector.broadcast %86 : f32 to vector<1x128xf32>
      %c0_47 = arith.constant 0 : index
      %c0_48 = arith.constant 0 : index
      %88 = vector.load %arg3[%c0_47, %c0_48] : memref<1x128xf32, #tpu.memory_space<vmem>>, vector<1x128xf32>
      tpu.vector_store %arg3[%c0_47, %c0_48], %87 {strides = array<i32>} : memref<1x128xf32, #tpu.memory_space<vmem>>, vector<1x128xf32>,
    } else {
    }
    return
  }
  func.func @transform_0(%arg0: i32) -> (i32, i32) {
    %c0_i32 = arith.constant 0 : i32
    %c0_i32_0 = arith.constant 0 : i32
    return %c0_i32, %arg0 : i32, i32
  }
  func.func @transform_1(%arg0: i32) -> (i32, i32) {
    %c0_i32 = arith.constant 0 : i32
    %c0_i32_0 = arith.constant 0 : i32
    return %c0_i32, %arg0 : i32, i32
  }
  func.func @transform_2(%arg0: i32) -> (i32, i32) {
    %c0_i32 = arith.constant 0 : i32
    %c0_i32_0 = arith.constant 0 : i32
    %c0_i32_1 = arith.constant 0 : i32
    return %c0_i32, %c0_i32_0 : i32, i32
  }
}

</mosaic_0001>

<bundles_post_ra>
// kernel: tpu_custom_call.1
= control target key start
LH: loop header
LB: loop body
LE: loop exit
PB: predicated region body
PF: predicated region fallthrough
CT: control target
= control target key end

     0   :  { %7 = vsyncpa [#allocation6], 0  ;;  %s629_s0 = inlined_call_operand.hbm [shape: f32[2,1024], index: 0, kind: input, shape index: {}]   ;;  %s630_s1 = inlined_call_operand.hbm [shape: bf16[2,1024], index: 1, kind: input, shape index: {}]   ;;  %s631_s2 = inlined_call_operand.hbm [shape: f32[1,128], index: 2, kind: output, shape index: {}]  }
   0x1   :  { %8 = vsyncpa [#allocation9], 0 }
   0x2   :  { %9 = vsyncpa [#allocation7], 0  ;;  %s482_s9 = smov [#allocation5]   ;;  %s483_s11 = smov [#allocation8]  }
   0x3   :  { %s16_s10 = sshll.u32 %s482_s9, 4  ;;  %s26_s12 = sshll.u32 %s483_s11, 4  ;;  %s17_s10 = int_to_ptr.vmem [resolvable:$true] %s16_s10  ;;  %s27_s12 = int_to_ptr.vmem [resolvable:$true] %s26_s12 }
   0x4   :  { %s410_s15 = scalar_lea.hbm %s629_s0, 256 }
   0x5   :  { %p411_p0 = scmp.ne.s32.totalorder %s629_s0, %s410_s15  ;;  %p414_p1 = scmp.lt.u32.totalorder %s410_s15, %s629_s0 }
   0x7   :  { %p416_p2 = pnand %p414_p1, %p411_p0 }
   0x9   :  { %419 = shalt.err (!%p416_p2)
}
   0xa   :  { %s420_s20 = scalar_lea.vmem %s17_s10, 256  ;;  %p425_p4 = scmp.lt.s32.totalorder %s17_s10, %s17_s10 }
   0xb   :  { %p421_p3 = scmp.ne.s32.totalorder %s17_s10, %s420_s20  ;;  %p426_p5 = scmp.lt.s32.totalorder %s420_s20, %s420_s20 }
   0xd   :  { %p427_p6 = por %p426_p5, %p425_p4 }
   0xf   :  { %p428_p7 = pnand %p427_p6, %p421_p3 }
  0x11   :  { %431 = shalt.err (!%p428_p7)
}
  0x12   :  { %19 = dma.hbm_to_vmem [thread:$0]  %s629_s0, 256, %s17_s10, [#allocation6]  }
  0x13   :  { %s432_s25 = scalar_lea.hbm %s630_s1, 128 }
  0x14   :  { %p433_p8 = scmp.ne.s32.totalorder %s630_s1, %s432_s25  ;;  %p436_p9 = scmp.lt.u32.totalorder %s432_s25, %s630_s1 }
  0x16   :  { %p438_p10 = pnand %p436_p9, %p433_p8 }
  0x18   :  { %441 = shalt.err (!%p438_p10)
}
  0x19   :  { %s442_s30 = scalar_lea.vmem %s27_s12, 128  ;;  %p447_p12 = scmp.lt.s32.totalorder %s27_s12, %s27_s12 }
  0x1a   :  { %p443_p11 = scmp.ne.s32.totalorder %s27_s12, %s442_s30  ;;  %p448_p13 = scmp.lt.s32.totalorder %s442_s30, %s442_s30 }
  0x1c   :  { %p449_p0 = por %p448_p13, %p447_p12 }
  0x1e   :  { %p450_p1 = pnand %p449_p0, %p443_p11 }
  0x20   :  { %453 = shalt.err (!%p450_p1)
}
  0x21   :  { %29 = dma.hbm_to_vmem [thread:$0]  %s630_s1, 128, %s27_s12, [#allocation9]  }
  0x22   :  { %476 = dma.done.wait [#allocation6], 256  }
  0x23   :  { %477 = vsyncadd [#allocation6], 4294967040 }
  0x24   :  { %478 = dma.done.wait [#allocation9], 128  }
  0x25   :  { %479 = vsyncadd [#allocation9], 4294967168  ;;  %v525_v0 = vld [vmem:[#allocation5] sm:$0xff]  ;;  %v527_v1 = vld [vmem:[#allocation5 + $0x8] sm:$0xff]  ;;  %v484_v12 = vmov 1983009808   ;;  %v158_v14 = vlaneseq }
  0x26   :  { %v51_v2 = vand.u32 2147483647, %v525_v0  ;;  %v52_v3 = vand.u32 2147483647, %v527_v1  ;;  %v156_v13 = vunpack.c.l.s4 %v484_v12  ;;  %v48_v15 = vld [vmem:[#allocation8] sm:$0xff]  ;;  %vm91_vm0 = vcmp.ge.f32.partialorder %v525_v0, 0.0 }
  0x27   :  { %v159_v17 = vshrl.u32 %v158_v14, 7  ;;  %v543_v19 = vunpack.c.l.bf16 %v48_v15  ;;  %v546_v21 = vunpack.c.h.bf16 %v48_v15  ;;  %vm92_vm1 = vcmp.ge.f32.partialorder %v527_v1, 0.0  ;;  %s485_s9 = smov [#allocation10]  }
  0x28   :  { %v53_v4 = vsub.f32 0.0, %v51_v2  ;;  %v54_v5 = vsub.f32 0.0, %v52_v3  ;;  %v157_v16 = vunpack.c.0.s8 %v156_v13  ;;  %vm196_vm2 = vcmask 1041408   ;;  %s378_s10 = sshll.u32 %s485_s9, 4  ;;  %s379_s10 = int_to_ptr.vmem [resolvable:$true] %s378_s10 }
  0x29   :  { %vm353_vm5 = vcmask 1024   ;;  %s454_s12 = scalar_lea.vmem %s379_s10, 16  ;;  %s458_s13 = scalar_lea.vmem %s379_s10, 32 }
  0x2a   :  { %v55_v6 = vmul.f32 1.442695, %v53_v4  ;;  %v57_v7 = vmul.f32 1.442695, %v54_v5  ;;  %v551_v24 = vsub.s32 %v157_v16, %v159_v17  ;;  %p455_p2 = scmp.ne.s32.totalorder %s379_s10, %s454_s12  ;;  %p459_p3 = scmp.lt.s32.totalorder %s379_s10, %s379_s10 }
  0x2b   :  { %p460_p4 = scmp.lt.s32.totalorder %s458_s13, %s454_s12 }
  0x2c   :  { %396 = vpow2.f32 %v55_v6 }
  0x2d   :  { %398 = vpow2.f32 %v57_v7  ;;  %p461_p5 = por %p460_p4, %p459_p3 }
  0x2f   :  { %p462_p6 = pnand %p461_p5, %p455_p2 }
  0x36   :  { %v531_v8 = vpop.eup %396 }
  0x37   :  { %v533_v9 = vpop.eup %398  ;;  %v536_v10 = vadd.f32 1.0, %v531_v8  ;;  %v62_v7 = vmul.f32 -0.5, %v531_v8 }
  0x38   :  { %v539_v11 = vadd.f32 1.0, %v533_v9 }
  0x39   :  { %400 = vrcp.f32 %v536_v10  ;;  %v63_v17 = vadd.f32 1.0, %v62_v7 }
  0x3a   :  { %402 = vrcp.f32 %v539_v11 }
  0x3b   :  { %404 = vlog2.f32 %v536_v10 }
  0x3c   :  { %406 = vlog2.f32 %v539_v11 }
  0x43   :  { %v401_v18 = vpop.eup %400 }
  0x44   :  { %v403_v20 = vpop.eup %402  ;;  %v93_v22 = vmul.f32 %v401_v18, %v531_v8 }
  0x45   :  { %v94_v23 = vmul.f32 %v403_v20, %v533_v9 }
  0x46   :  { %v95_v25 = vsel %vm91_vm0, %v401_v18, %v93_v22 }
  0x47   :  { %v96_v26 = vsel %vm92_vm1, %v403_v20, %v94_v23  ;;  %v141_v27 = vadd.f32 %v95_v25, %v543_v19  ;;  %v133_v28 = vmul.f32 %v95_v25, %v543_v19  ;;  %v97_v30 = vmax.f32 %v95_v25, 1e-06 }
  0x48   :  { %v142_v29 = vadd.f32 %v96_v26, %v546_v21  ;;  %v98_v31 = vmax.f32 %v96_v26, 1e-06  ;;  %v134_v37 = vmul.f32 %v96_v26, %v546_v21  ;;  %v65_v26 = vand.u32 2147483647, %v531_v8 }
  0x49   :  { %v289_v32 = vcombine.high %v141_v27, %v141_v27  ;;  %v296_v33 = vrot.slane %v141_v27, %v551_v24  ;;  %v226_v34 = vcombine.high %v133_v28, %v133_v28  ;;  %v233_v38 = vrot.slane %v133_v28, %v551_v24 }
  0x4a   :  { %v306_v35 = vcombine.high %v142_v29, %v142_v29  ;;  %v313_v36 = vrot.slane %v142_v29, %v551_v24  ;;  %v99_v45 = vmin.f32 %v97_v30, 0.999999  ;;  %v100_v47 = vmin.f32 %v98_v31, 0.999999 }
  0x4b   :  { %v303_v39 = vrot.slane %v289_v32, %v551_v24  ;;  %v304_v40 = vcombine.high %v296_v33, %v296_v33  ;;  %v331_v41 = vsel %vm196_vm2, %v296_v33, 0.0  ;;  %v240_v42 = vrot.slane %v226_v34, %v551_v24 }
  0x4c   :  { %v320_v43 = vrot.slane %v306_v35, %v551_v24  ;;  %v321_v44 = vcombine.high %v313_v36, %v313_v36  ;;  %v241_v46 = vcombine.high %v233_v38, %v233_v38  ;;  %v338_v53 = vsel %vm196_vm2, %v313_v36, 0.0 }
  0x4d   :  { %v305_v48 = vcombine.high %v303_v39, %v303_v39  ;;  %v332_v49 = vsel %vm196_vm2, %v304_v40, 0.0  ;;  %v334_v50 = vsel %vm196_vm2, %v303_v39, 0.0  ;;  %v242_v54 = vcombine.high %v240_v42, %v240_v42 }
  0x4e   :  { %v322_v51 = vcombine.high %v320_v43, %v320_v43  ;;  %v333_v52 = vadd.f32 %v332_v49, %v331_v41  ;;  %v243_v56 = vcombine.high %v134_v37, %v134_v37  ;;  %v250_v57 = vrot.slane %v134_v37, %v551_v24  ;;  %v405_v49 = vpop.eup %404 }
  0x4f   :  { %v336_v55 = vsel %vm196_vm2, %v305_v48, 0.0  ;;  %v268_v58 = vsel %vm196_vm2, %v233_v38, 0.0  ;;  %v340_v60 = vsel %vm196_vm2, %v321_v44, 0.0  ;;  %v269_v61 = vsel %vm196_vm2, %v241_v46, 0.0 }
  0x50   :  { %v335_v59 = vadd.f32 %v334_v50, %v333_v52  ;;  %v271_v62 = vsel %vm196_vm2, %v240_v42, 0.0  ;;  %v342_v63 = vsel %vm196_vm2, %v320_v43, 0.0  ;;  %v257_v2 = vrot.slane %v243_v56, %v551_v24 }
  0x51   :  { %v258_v3 = vcombine.high %v250_v57, %v250_v57  ;;  %v270_v4 = vadd.f32 %v269_v61, %v268_v58  ;;  %v273_v6 = vsel %vm196_vm2, %v242_v54, 0.0  ;;  %v344_v12 = vsel %vm196_vm2, %v322_v51, 0.0 }
  0x52   :  { %v337_v5 = vadd.f32 %v336_v55, %v335_v59  ;;  %v259_v13 = vcombine.high %v257_v2, %v257_v2  ;;  %v275_v15 = vsel %vm196_vm2, %v250_v57, 0.0  ;;  %v101_v18 = vsub.f32 1.0, %v99_v45 }
  0x53   :  { %v272_v14 = vadd.f32 %v271_v62, %v270_v4  ;;  %v277_v22 = vsel %vm196_vm2, %v258_v3, 0.0  ;;  %v279_v23 = vsel %vm196_vm2, %v257_v2, 0.0  ;;  %v77_v27 = vmax.f32 %v525_v0, 0.0 }
  0x54   :  { %v339_v16 = vadd.f32 %v338_v53, %v337_v5  ;;  %v281_v10 = vsel %vm196_vm2, %v259_v13, 0.0  ;;  %v102_v28 = vsub.f32 1.0, %v100_v47  ;;  %v64_v30 = vmul.f32 %v531_v8, %v63_v17 }
  0x55   :  { %v274_v20 = vadd.f32 %v273_v6, %v272_v14  ;;  %v103_v31 = vmul.f32 0.75, %v101_v18  ;;  %v109_v32 = vmul.f32 0.25, %v99_v45  ;;  %v79_v33 = vmul.f32 %v543_v19, %v525_v0 }
  0x56   :  { %v341_v25 = vadd.f32 %v340_v60, %v339_v16  ;;  %v104_v34 = vmul.f32 0.75, %v102_v28  ;;  %v110_v35 = vmul.f32 0.25, %v100_v47  ;;  %v113_v39 = vsub.f32 1.0, %v543_v19 }
  0x57   :  { %v276_v29 = vadd.f32 %v275_v15, %v274_v20  ;;  %v105_v37 = vmul.f32 %v103_v31, %v101_v18  ;;  %v111_v38 = vmul.f32 %v109_v32, %v99_v45  ;;  %v71_v41 = vmul.f32 -0.5, %v533_v9 }
  0x58   :  { %v343_v11 = vadd.f32 %v342_v63, %v341_v25  ;;  %v106_v42 = vmul.f32 %v104_v34, %v102_v28  ;;  %v112_v43 = vmul.f32 %v110_v35, %v100_v47  ;;  %v114_v46 = vsub.f32 1.0, %v546_v21 }
  0x59   :  { %v278_v36 = vadd.f32 %v277_v22, %v276_v29  ;;  %v107_v8 = vmul.f32 %v105_v37, %v543_v19  ;;  %v115_v48 = vmul.f32 %v113_v39, %v111_v38  ;;  %vm593_vm3 = vcmp.lt.f32.partialorder %v65_v26, 0.0004427343  ;;  %v407_v19 = vpop.eup %406 }
  0x5a   :  { %v345_v40 = vadd.f32 %v344_v12, %v343_v11  ;;  %v72_v45 = vadd.f32 1.0, %v71_v41  ;;  %v81_v50 = vsub.f32 %v77_v27, %v79_v33  ;;  %v108_v51 = vmul.f32 %v106_v42, %v546_v21 }
  0x5b   :  { %v280_v44 = vadd.f32 %v279_v23, %v278_v36  ;;  %v61_v53 = vmul.f32 0.6931472, %v405_v49  ;;  %v74_v47 = vand.u32 2147483647, %v533_v9  ;;  %v78_v54 = vmax.f32 %v527_v1, 0.0 }
  0x5c   :  { %346 = vadd.xlane.f32.xlu0 %v345_v40  ;;  %v73_v55 = vmul.f32 %v533_v9, %v72_v45  ;;  %v80_v56 = vmul.f32 %v546_v21, %v527_v1  ;;  %v116_v57 = vmul.f32 %v114_v46, %v112_v43  ;;  %v117_v58 = vadd.f32 %v115_v48, %v107_v8 }
  0x5d   :  { %v282_v52 = vadd.f32 %v281_v10, %v280_v44  ;;  %v67_v59 = vsel %vm593_vm3, %v64_v30, %v61_v53  ;;  %v70_v60 = vmul.f32 0.6931472, %v407_v19  ;;  %vm75_vm4 = vcmp.lt.f32.partialorder %v74_v47, 0.0004427343 }
  0x5e   :  { %v82_v61 = vsub.f32 %v78_v54, %v80_v56  ;;  %v83_v62 = vadd.f32 %v81_v50, %v67_v59  ;;  %v118_v63 = vadd.f32 %v116_v57, %v108_v51  ;;  %v119_v2 = vmul.f32 0.4, %v117_v58 }
  0x5f   :  { %v76_v3 = vsel %vm75_vm4, %v73_v55, %v70_v60 }
  0x60   :  { %283 = vadd.xlane.f32.xlu0 %v282_v52  ;;  %v84_v4 = vadd.f32 %v82_v61, %v76_v3  ;;  %v120_v5 = vmul.f32 0.4, %v118_v63  ;;  %v121_v6 = vadd.f32 0.3, %v119_v2 }
  0x62   :  { %v122_v9 = vadd.f32 0.3, %v120_v5  ;;  %v123_v7 = vmul.f32 %v121_v6, %v83_v62 }
  0x64   :  { %v124_v12 = vmul.f32 %v122_v9, %v84_v4  ;;  %v154_v1 = vcombine.high %v123_v7, %v123_v7  ;;  %v161_v21 = vrot.slane %v123_v7, %v551_v24 }
  0x66   :  { %v168_v13 = vrot.slane %v154_v1, %v551_v24  ;;  %v169_v14 = vcombine.high %v161_v21, %v161_v21  ;;  %v171_v15 = vcombine.high %v124_v12, %v124_v12  ;;  %v178_v16 = vrot.slane %v124_v12, %v551_v24 }
  0x67   :  { %v197_v17 = vsel %vm196_vm2, %v161_v21, 0.0 }
  0x68   :  { %v170_v18 = vcombine.high %v168_v13, %v168_v13  ;;  %v198_v20 = vsel %vm196_vm2, %v169_v14, 0.0  ;;  %v200_v23 = vsel %vm196_vm2, %v168_v13, 0.0  ;;  %v185_v10 = vrot.slane %v171_v15, %v551_v24 }
  0x69   :  { %v199_v22 = vadd.f32 %v198_v20, %v197_v17  ;;  %v186_v25 = vcombine.high %v178_v16, %v178_v16  ;;  %v204_v28 = vsel %vm196_vm2, %v178_v16, 0.0 }
  0x6a   :  { %v202_v26 = vsel %vm196_vm2, %v170_v18, 0.0  ;;  %v187_v30 = vcombine.high %v185_v10, %v185_v10  ;;  %v208_v11 = vsel %vm196_vm2, %v185_v10, 0.0 }
  0x6b   :  { %v201_v27 = vadd.f32 %v200_v23, %v199_v22  ;;  %v206_v31 = vsel %vm196_vm2, %v186_v25, 0.0 }
  0x6c   :  { %v210_v34 = vsel %vm196_vm2, %v187_v30, 0.0 }
  0x6d   :  { %v203_v29 = vadd.f32 %v202_v26, %v201_v27 }
  0x6f   :  { %v205_v32 = vadd.f32 %v204_v28, %v203_v29 }
  0x71   :  { %v207_v33 = vadd.f32 %v206_v31, %v205_v32 }
  0x73   :  { %v209_v35 = vadd.f32 %v208_v11, %v207_v33 }
  0x75   :  { %v211_v36 = vadd.f32 %v210_v34, %v209_v35 }
  0x77   :  { %212 = vadd.xlane.f32.xlu1 %v211_v36 }
  0xe9   :  { %v347_v24 = vpop.xlane.xlu0 %346 }
  0xea   :  { %v348_v37 = vadd.f32 1.0, %v347_v24 }
  0xec   :  { %408 = vrcp.f32 %v348_v37 }
  0xed   :  { %v284_v38 = vpop.xlane.xlu0 %283 }
  0xee   :  { %v349_v39 = vmul.f32 2.0, %v284_v38 }
  0xf0   :  { %v350_v40 = vadd.f32 1.0, %v349_v39 }
  0xf6   :  { %v409_v41 = vpop.eup %408 }
  0xf7   :  { %v352_v42 = vmul.f32 %v409_v41, %v350_v40 }
  0xf9   :  { %v354_v43 = vsel %vm353_vm5, %v352_v42, 0.0 }
  0xfa   :  { %355 = vadd.xlane.f32.xlu1 %v354_v43 }
 0x104   :  { %v213_v44 = vpop.xlane.xlu1 %212 }
 0x105   :  { %v214_v8 = vrot.slane %v213_v44, 4 }
 0x107   :  { %v215_v46 = vadd.f32 %v214_v8, %v213_v44 }
 0x109   :  { %v216_v48 = vrot.slane %v215_v46, 2 }
 0x10b   :  { %v217_v49 = vadd.f32 %v216_v48, %v215_v46 }
 0x10d   :  { %v218_v0 = vrot.slane %v217_v49, 1 }
 0x10f   :  { %v219_v45 = vadd.f32 %v218_v0, %v217_v49 }
 0x111   :  { %388 = vpush %v219_v45 }
 0x142   :  { %s389_s1 = spop %388 }
 0x143   :  { %s221_s7 = smul.f32 0.00048828125, %s389_s1 }
 0x187   :  { %v356_v50 = vpop.xlane.xlu1 %355 }
 0x188   :  { %v357_v51 = vrot.slane %v356_v50, 4 }
 0x18a   :  { %v358_v52 = vadd.f32 %v357_v51, %v356_v50 }
 0x18c   :  { %v359_v53 = vrot.slane %v358_v52, 2 }
 0x18e   :  { %v360_v47 = vadd.f32 %v359_v53, %v358_v52 }
 0x190   :  { %v361_v54 = vrot.slane %v360_v47, 1 }
 0x192   :  { %v362_v19 = vadd.f32 %v361_v54, %v360_v47 }
 0x194   :  { %390 = vpush %v362_v19 }
 0x1c5   :  { %s391_s4 = spop %390 }
 0x1c6   :  { %s366_s5 = smul.f32 0.5, %s391_s4 }
 0x1c8   :  { %s367_s6 = ssub.f32 1.0, %s366_s5 }
 0x1ca   :  { %s368_s8 = smul.f32 0.3, %s367_s6 }
 0x1cc   :  { %s369_s11 = sadd.f32 %s368_s8, %s221_s7 }
 0x1ce   :  { %v370_v55 = vstv %s369_s11 }
 0x1cf   :  { %371 = vst [vmem:[#allocation10] sm:$0x1] %v370_v55 }
 0x1d0   :  { %465 = shalt.err (!%p462_p6)
}
 0x1d1   :  { %s466_s16 = scalar_lea.hbm %s631_s2, 16 }
 0x1d2   :  { %p467_p7 = scmp.ne.s32.totalorder %s631_s2, %s466_s16  ;;  %p470_p8 = scmp.lt.u32.totalorder %s466_s16, %s631_s2 }
 0x1d4   :  { %p472_p9 = pnand %p470_p8, %p467_p7 }
 0x1d6   :  { %475 = shalt.err (!%p472_p9)
}
 0x1d7   :  { %381 = dma.vmem_to_hbm [thread:$0]  %s379_s10, 16, %s631_s2, [#allocation7]  }
 0x1d8   :  { %480 = dma.done.wait [#allocation7], 16  }
 0x1d9   :  { %481 = vsyncadd [#allocation7], 4294967280 }
 0x1da   :  { %385 = vsyncpa [#allocation6], 1 }
 0x1db   :  { %386 = vsyncpa [#allocation9], 1 }
 0x1dc   :  { %387 = vsyncpa [#allocation7], 1 }

</bundles_post_ra>
